<compile_context>
chip_gen: v7x
topology: tpu7x:2x2x1
jax: 0.10.0
libtpu: 0.0.40
codegen_flags: <defaults>
</compile_context>

<pallas_src>
import jax
import jax.numpy as jnp
from jax.experimental import pallas as pl
from jax.experimental.pallas import tpu as pltpu

_MASK_FILL = -1e12  # matches masked_fill_(num_mask, -1000000000000.0)


def _score_kernel(hidden_ref, ne_ref, mask_ref, w_h_ref, w_e_ref, b_ref,
                  w_s_ref, out_ref):
    TB, S, I = ne_ref.shape
    H = w_h_ref.shape[1]

    # Hidden-side term, computed once per batch row; bias folded in here so we
    # never add a full-width (TB*S, H) broadcast bias separately.
    h_term = (jnp.dot(hidden_ref[...], w_h_ref[...],
                      preferred_element_type=jnp.float32)
              + b_ref[...].astype(jnp.float32))                    # (TB, H)

    # Embedding-side term: one fused MXU matmul over the collapsed slab.
    x = ne_ref[...].reshape(TB * S, I)
    e_term = jnp.dot(x, w_e_ref[...],
                     preferred_element_type=jnp.float32)           # (TB*S, H)

    energy = jnp.tanh(e_term.reshape(TB, S, H) + h_term[:, None, :])  # (TB,S,H)

    # score Linear(H, 1, bias=False): lane-wise multiply + lane reduction
    # -> lane-dense (TB, S) output instead of a (TB*S, 1) matmul result.
    scores = jnp.sum(energy * w_s_ref[...].astype(jnp.float32), axis=-1)

    scores = jnp.where(mask_ref[...] != 0, _MASK_FILL, scores)
    out_ref[...] = scores.astype(out_ref.dtype)


def prepare_params(w_attn, b_attn, w_score, hidden_size, input_size,
                   use_bf16=False):
    """One-time parameter conversion (hoisted out of the forward path).

    w_attn:  (H, H + I)  PyTorch Linear weight (y = x @ W.T + b)
    b_attn:  (H,)
    w_score: (1, H)      Linear(H, 1, bias=False) weight
    """
    dt = jnp.bfloat16 if use_bf16 else jnp.float32
    w_attn_t = jnp.asarray(w_attn, jnp.float32).T        # (H + I, H)
    return {
        "hidden_size": hidden_size,
        "input_size": input_size,
        "dtype": dt,
        # rows hit by `hidden` (first H features of energy_in)
        "w_h": w_attn_t[:hidden_size, :].astype(dt),      # (H, H)
        # rows hit by `num_embeddings` (remaining I features)
        "w_e": w_attn_t[hidden_size:, :].astype(dt),      # (I, H)
        "b_attn": jnp.asarray(b_attn, jnp.float32).reshape(1, hidden_size),
        "w_score": jnp.asarray(w_score, jnp.float32).reshape(1, hidden_size),
    }


def score_forward(hidden, num_embeddings, params, num_mask=None, *,
                  block_b=None):
    """hidden: (B, 1, H) (or (B, H)); num_embeddings: (B, S, I);
    num_mask: optional (B, S) bool.  Returns (B, S) f32 scores."""
    H = params["hidden_size"]
    I = params["input_size"]
    dt = params["dtype"]
    B, S, _ = num_embeddings.shape

    hidden2d = hidden.reshape(B, H).astype(dt)
    ne = num_embeddings.astype(dt)
    if num_mask is None:
        mask = jnp.zeros((B, S), jnp.int32)
    else:
        mask = num_mask.astype(jnp.int32)

    # Batch tile: a multiple of 8 sublanes when possible; must divide B.
    if block_b is None:
        block_b = B if B <= 128 else 128
    if B % block_b != 0:
        block_b = B
    grid = (B // block_b,)

    out = pl.pallas_call(
        _score_kernel,
        out_shape=jax.ShapeDtypeStruct((B, S), jnp.float32),
        grid_spec=pltpu.PrefetchScalarGridSpec(
            num_scalar_prefetch=0,
            grid=grid,
            in_specs=[
                pl.BlockSpec((block_b, H), lambda i: (i, 0)),        # hidden
                pl.BlockSpec((block_b, S, I), lambda i: (i, 0, 0)),  # num_emb
                pl.BlockSpec((block_b, S), lambda i: (i, 0)),        # mask
                pl.BlockSpec((H, H), lambda i: (0, 0)),              # w_h (resident)
                pl.BlockSpec((I, H), lambda i: (0, 0)),              # w_e (resident)
                pl.BlockSpec((1, H), lambda i: (0, 0)),              # b_attn
                pl.BlockSpec((1, H), lambda i: (0, 0)),              # w_score
            ],
            out_specs=pl.BlockSpec((block_b, S), lambda i: (i, 0)),
        ),
        compiler_params=pltpu.CompilerParams(
            dimension_semantics=("parallel",),
            vmem_limit_bytes=48 * 1024 * 1024,
        ),
    )(hidden2d, ne, mask,
      params["w_h"], params["w_e"], params["b_attn"], params["w_score"])
    return out


def _reference(hidden, num_embeddings, w_attn, b_attn, w_score, num_mask=None):
    """Pure-JAX mirror of the PyTorch forward."""
    B, S, _ = num_embeddings.shape
    H = w_attn.shape[0]
    hidden_rep = jnp.broadcast_to(hidden.reshape(B, 1, H), (B, S, H))
    energy_in = jnp.concatenate([hidden_rep, num_embeddings], axis=2)
    energy_in = energy_in.reshape(B * S, -1)
    energy = jnp.tanh(energy_in @ w_attn.T + b_attn)
    score = (energy @ w_score.T).reshape(B, S)
    if num_mask is not None:
        score = jnp.where(num_mask, _MASK_FILL, score)
    return score


if __name__ == "__main__":
    # TODO(synk): masked_fill_ is in-place in PyTorch; implemented functionally.
    B, H, S = 2, 32, 8
    I = 2 * H  # input_size = hidden_size * 2 per the module docstring

    key = jax.random.PRNGKey(0)
    k_w, k_b, k_s, k_h, k_e, k_m = jax.random.split(key, 6)

    scale = 0.1
    w_attn = scale * jax.random.normal(k_w, (H, H + I), jnp.float32)
    b_attn = scale * jax.random.normal(k_b, (H,), jnp.float32)
    w_score = scale * jax.random.normal(k_s, (1, H), jnp.float32)

    hidden = jax.random.normal(k_h, (B, 1, H), jnp.float32)
    num_embeddings = jax.random.normal(k_e, (B, S, I), jnp.float32)
    num_mask = jax.random.bernoulli(k_m, 0.3, (B, S))

    params = prepare_params(w_attn, b_attn, w_score, hidden_size=H,
                            input_size=I, use_bf16=False)

    # masked path
    out_masked = score_forward(hidden, num_embeddings, params, num_mask)
    # unmasked path (num_mask=None)
    out_plain = score_forward(hidden, num_embeddings, params, None)
    jax.block_until_ready((out_masked, out_plain))

    ref_masked = _reference(hidden, num_embeddings, w_attn, b_attn, w_score,
                            num_mask)
    ref_plain = _reference(hidden, num_embeddings, w_attn, b_attn, w_score,
                           None)

    assert out_masked.shape == (B, S) and out_plain.shape == (B, S)
    assert jnp.allclose(out_masked, ref_masked, atol=1e-5)
    assert jnp.allclose(out_plain, ref_plain, atol=1e-5)
    print("KERNEL_OK")
</pallas_src>

<mosaic_0001>
module attributes {stable_mosaic.version = 11 : i64} {
  func.func @_score_kernel(%arg0: i32, %arg1: memref<2x32xf32, #tpu.memory_space<vmem>>, %arg2: memref<2x8x64xf32, #tpu.memory_space<vmem>>, %arg3: memref<2x8xi32, #tpu.memory_space<vmem>>, %arg4: memref<32x32xf32, #tpu.memory_space<vmem>>, %arg5: memref<64x32xf32, #tpu.memory_space<vmem>>, %arg6: memref<1x32xf32, #tpu.memory_space<vmem>>, %arg7: memref<1x32xf32, #tpu.memory_space<vmem>>, %arg8: memref<2x8xf32, #tpu.memory_space<vmem>>) attributes {dimension_semantics = [#tpu.dimension_semantics<parallel>], iteration_bounds = array<i64: 1>, scalar_prefetch = 0 : i64, scratch_operands = 0 : i64, tpu.core_type = #tpu.core_type<tc>, window_params = [{transform_indices = @transform_0, window_bounds = array<i64: 2, 32>}, {transform_indices = @transform_1, window_bounds = array<i64: 2, 8, 64>}, {transform_indices = @transform_2, window_bounds = array<i64: 2, 8>}, {pipeline_mode = #tpu.pipeline_mode<synchronous>, transform_indices = @transform_3, window_bounds = array<i64: 32, 32>}, {pipeline_mode = #tpu.pipeline_mode<synchronous>, transform_indices = @transform_4, window_bounds = array<i64: 64, 32>}, {pipeline_mode = #tpu.pipeline_mode<synchronous>, transform_indices = @transform_5, window_bounds = array<i64: 1, 32>}, {pipeline_mode = #tpu.pipeline_mode<synchronous>, transform_indices = @transform_6, window_bounds = array<i64: 1, 32>}, {transform_indices = @transform_7, window_bounds = array<i64: 2, 8>}]} {
    %c0 = arith.constant 0 : index
    %c0_0 = arith.constant 0 : index
    %0 = vector.load %arg1[%c0, %c0_0] : memref<2x32xf32, #tpu.memory_space<vmem>>, vector<2x32xf32>
    %c0_1 = arith.constant 0 : index
    %c0_2 = arith.constant 0 : index
    %1 = vector.load %arg4[%c0_1, %c0_2] : memref<32x32xf32, #tpu.memory_space<vmem>>, vector<32x32xf32>
    %cst = arith.constant dense<0.000000e+00> : vector<2x32xf32>
    %2 = tpu.matmul %0, %1, %cst {dimension_numbers = #tpu.dot_dimension_numbers<[1], [0], [0], [1], [0, 0, 1, 1], [], []>} : vector<2x32xf32>, vector<32x32xf32>, vector<2x32xf32> -> vector<2x32xf32>
    %c0_3 = arith.constant 0 : index
    %c0_4 = arith.constant 0 : index
    %3 = vector.load %arg6[%c0_3, %c0_4] : memref<1x32xf32, #tpu.memory_space<vmem>>, vector<1x32xf32>
    %4 = vector.broadcast %3 : vector<1x32xf32> to vector<2x32xf32>
    %5 = arith.addf %2, %4 : vector<2x32xf32>
    %c0_5 = arith.constant 0 : index
    %c0_6 = arith.constant 0 : index
    %c0_7 = arith.constant 0 : index
    %6 = vector.load %arg2[%c0_5, %c0_6, %c0_7] : memref<2x8x64xf32, #tpu.memory_space<vmem>>, vector<2x8x64xf32>
    %7 = vector.shape_cast %6 : vector<2x8x64xf32> to vector<16x64xf32>
    %c0_8 = arith.constant 0 : index
    %c0_9 = arith.constant 0 : index
    %8 = vector.load %arg5[%c0_8, %c0_9] : memref<64x32xf32, #tpu.memory_space<vmem>>, vector<64x32xf32>
    %cst_10 = arith.constant dense<0.000000e+00> : vector<16x32xf32>
    %9 = tpu.matmul %7, %8, %cst_10 {dimension_numbers = #tpu.dot_dimension_numbers<[1], [0], [0], [1], [0, 0, 1, 1], [], []>} : vector<16x64xf32>, vector<64x32xf32>, vector<16x32xf32> -> vector<16x32xf32>
    %10 = vector.shape_cast %9 : vector<16x32xf32> to vector<2x8x32xf32>
    %11 = vector.shape_cast %5 : vector<2x32xf32> to vector<2x1x32xf32>
    %12 = vector.broadcast %11 : vector<2x1x32xf32> to vector<2x8x32xf32>
    %13 = arith.addf %10, %12 : vector<2x8x32xf32>
    %14 = math.tanh %13 : vector<2x8x32xf32>
    %c0_11 = arith.constant 0 : index
    %c0_12 = arith.constant 0 : index
    %15 = vector.load %arg7[%c0_11, %c0_12] : memref<1x32xf32, #tpu.memory_space<vmem>>, vector<1x32xf32>
    %16 = vector.shape_cast %15 : vector<1x32xf32> to vector<1x1x32xf32>
    %17 = vector.broadcast %16 : vector<1x1x32xf32> to vector<2x8x32xf32>
    %18 = arith.mulf %14, %17 : vector<2x8x32xf32>
    %cst_13 = arith.constant dense<0.000000e+00> : vector<2x8xf32>
    %19 = vector.multi_reduction <add>, %18, %cst_13 [2] : vector<2x8x32xf32> to vector<2x8xf32>
    %c0_14 = arith.constant 0 : index
    %c0_15 = arith.constant 0 : index
    %20 = vector.load %arg3[%c0_14, %c0_15] : memref<2x8xi32, #tpu.memory_space<vmem>>, vector<2x8xi32>
    %c0_i32 = arith.constant 0 : i32
    %21 = vector.broadcast %c0_i32 : i32 to vector<2x8xi32>
    %22 = arith.cmpi ne, %20, %21 : vector<2x8xi32>
    %cst_16 = arith.constant -9.99999995E+11 : f32
    %23 = vector.broadcast %cst_16 : f32 to vector<2x8xf32>
    %24 = arith.select %22, %23, %19 : vector<2x8xi1>, vector<2x8xf32>
    %c0_17 = arith.constant 0 : index
    %c0_18 = arith.constant 0 : index
    %25 = vector.load %arg8[%c0_17, %c0_18] : memref<2x8xf32, #tpu.memory_space<vmem>>, vector<2x8xf32>
    tpu.vector_store %arg8[%c0_17, %c0_18], %24 {strides = array<i32>} : memref<2x8xf32, #tpu.memory_space<vmem>>, vector<2x8xf32>,
    return
  }
  func.func @transform_0(%arg0: i32) -> (i32, i32) {
    %c0_i32 = arith.constant 0 : i32
    %c0_i32_0 = arith.constant 0 : i32
    return %arg0, %c0_i32 : i32, i32
  }
  func.func @transform_1(%arg0: i32) -> (i32, i32, i32) {
    %c0_i32 = arith.constant 0 : i32
    %c0_i32_0 = arith.constant 0 : i32
    %c0_i32_1 = arith.constant 0 : i32
    return %arg0, %c0_i32, %c0_i32_0 : i32, i32, i32
  }
  func.func @transform_2(%arg0: i32) -> (i32, i32) {
    %c0_i32 = arith.constant 0 : i32
    %c0_i32_0 = arith.constant 0 : i32
    return %arg0, %c0_i32 : i32, i32
  }
  func.func @transform_3(%arg0: i32) -> (i32, i32) {
    %c0_i32 = arith.constant 0 : i32
    %c0_i32_0 = arith.constant 0 : i32
    %c0_i32_1 = arith.constant 0 : i32
    return %c0_i32, %c0_i32_0 : i32, i32
  }
  func.func @transform_4(%arg0: i32) -> (i32, i32) {
    %c0_i32 = arith.constant 0 : i32
    %c0_i32_0 = arith.constant 0 : i32
    %c0_i32_1 = arith.constant 0 : i32
    return %c0_i32, %c0_i32_0 : i32, i32
  }
  func.func @transform_5(%arg0: i32) -> (i32, i32) {
    %c0_i32 = arith.constant 0 : i32
    %c0_i32_0 = arith.constant 0 : i32
    %c0_i32_1 = arith.constant 0 : i32
    return %c0_i32, %c0_i32_0 : i32, i32
  }
  func.func @transform_6(%arg0: i32) -> (i32, i32) {
    %c0_i32 = arith.constant 0 : i32
    %c0_i32_0 = arith.constant 0 : i32
    %c0_i32_1 = arith.constant 0 : i32
    return %c0_i32, %c0_i32_0 : i32, i32
  }
  func.func @transform_7(%arg0: i32) -> (i32, i32) {
    %c0_i32 = arith.constant 0 : i32
    %c0_i32_0 = arith.constant 0 : i32
    return %arg0, %c0_i32 : i32, i32
  }
}

</mosaic_0001>

<bundles_post_ra>
// kernel: tpu_custom_call.1
= control target key start
LH: loop header
LB: loop body
LE: loop exit
PB: predicated region body
PF: predicated region fallthrough
CT: control target
= control target key end

     0   :  { %v396_v3 = vmov 0.0|0.0   ;;  %vm397_vm0 = vmmov 0   ;;  %v398_v8 = vmov 0.0   ;;  %vm123_vm1 = vcmask 523264   ;;  %s512_s0 = inlined_call_operand.vmem [shape: f32[2,32], index: 0, kind: input, shape index: {}]   ;;  %s513_s1 = inlined_call_operand.vmem [shape: f32[2,8,64], index: 1, kind: input, shape index: {}]   ;;  %s514_s2 = inlined_call_operand.vmem [shape: s32[2,8], index: 2, kind: input, shape index: {}]   ;;  %s515_s3 = inlined_call_operand.vmem [shape: f32[32,32], index: 3, kind: input, shape index: {}]   ;;  %s516_s4 = inlined_call_operand.vmem [shape: f32[64,32], index: 4, kind: input, shape index: {}]   ;;  %s517_s5 = inlined_call_operand.vmem [shape: f32[1,32], index: 5, kind: input, shape index: {}]   ;;  %s518_s6 = inlined_call_operand.vmem [shape: f32[1,32], index: 6, kind: input, shape index: {}]   ;;  %s519_s7 = inlined_call_operand.hbm [shape: f32[2,8], index: 7, kind: output, shape index: {}]  }
   0x1   :  { %v28_v0 = vld [vmem:[%s515_s3] sm:$0xff]  ;;  %v29_v1 = vld [vmem:[%s515_s3 + $0x8] sm:$0xff]  ;;  %341 = vmatprep.subr.bf16.mxu0 %v396_v3  ;;  %v30_v6 = vld [vmem:[%s515_s3 + $0x10] sm:$0xff]  ;;  %319 = vmatprep.mubr.msk.f32.mxu0 %vm397_vm0, %v398_v8 }
   0x2   :  { %v115_v2 = vld [vmem:[%s516_s4] sm:$0xff]  ;;  %v342_v4 = vpack.c.bf16 %v29_v1, %v28_v0  ;;  %v116_v5 = vld [vmem:[%s516_s4 + $0x8] sm:$0xff]  ;;  %v31_v7 = vld [vmem:[%s515_s3 + $0x18] sm:$0xff] }
   0x3   :  { %v347_v9 = vpack.c.bf16 %v116_v5, %v115_v2  ;;  %v117_v10 = vld [vmem:[%s516_s4 + $0x10] sm:$0xff]  ;;  %v118_v11 = vld [vmem:[%s516_s4 + $0x18] sm:$0xff]  ;;  %v345_v12 = vpack.c.bf16 %v31_v7, %v30_v6  ;;  %v119_v14 = vld [vmem:[%s516_s4 + $0x20] sm:$0xff] }
   0x4   :  { %343 = vmatpush3.bf16.msra.mxu0 %v342_v4  ;;  %v351_v13 = vpack.c.bf16 %v118_v11, %v117_v10  ;;  %v120_v15 = vld [vmem:[%s516_s4 + $0x28] sm:$0xff]  ;;  %v113_v16 = vld [vmem:[%s513_s1] sm:$0xff] }
   0x5   :  { %348 = vmatprep.subr.bf16.mxu1 %v347_v9  ;;  %344 = vmatprep.subr.bf16.mxu0 %v396_v3 }
   0x6   :  { %350 = vmatpush3.bf16.msra.mxu1 %v347_v9  ;;  %338 = vmatprep.mubr.msk.f32.mxu1 %vm123_vm1, %v113_v16 }
   0x7   :  { %12 = vsyncpa [#allocation3], 0  ;;  %352 = vmatprep.subr.bf16.mxu1 %v351_v13  ;;  %v355_v17 = vpack.c.bf16 %v120_v15, %v119_v14  ;;  %v27_v18 = vld [vmem:[%s512_s0] sm:$0x3]  ;;  %vm39_vm2 = vcmask 261120   ;;  %v121_v19 = vld [vmem:[%s516_s4 + $0x30] sm:$0xff]  ;;  %v209_v23 = vlaneseq }
   0x8   :  { %346 = vmatpush3.bf16.msra.mxu0 %v345_v12  ;;  %v122_v20 = vld [vmem:[%s516_s4 + $0x38] sm:$0xff]  ;;  %v114_v22 = vld [vmem:[%s513_s1 + $0x8] sm:$0xff]  ;;  %v399_v27 = vmov 1966171168   ;;  %v291_v30 = vld [vmem:[%s517_s5] ss:$0 sm:$0xff] }
   0x9   :  { %v359_v21 = vpack.c.bf16 %v122_v20, %v121_v19  ;;  %v210_v24 = vshrl.u32 %v209_v23, 7  ;;  %v262_v25 = vand.u32 127, %v209_v23  ;;  %v207_v28 = vunpack.c.l.s4 %v399_v27  ;;  %v295_v46 = vld [vmem:[%s518_s6] ss:$0 sm:$0xff]  ;;  %s400_s9 = smov [#allocation2]  }
   0xa   :  { %354 = vmatpush3.bf16.msra.mxu1 %v351_v13  ;;  %v257_v54 = vld [vmem:[%s514_s2] sm:$0x3]  ;;  %vm271_vm3 = vcmask 1041409   ;;  %s283_s10 = sshll.u32 %s400_s9, 4  ;;  %vm275_vm5 = vcmask 58368   ;;  %s284_s10 = int_to_ptr.vmem [resolvable:$true] %s283_s10 }
   0xb   :  { %320 = vmatmul.mubr.msk.f32.vlgmr.msra.gmra.mrb[0].mxu0 %vm39_vm2, %v27_v18  ;;  %356 = vmatprep.subr.bf16.mxu1 %v355_v17  ;;  %v265_v26 = vsub.s32 %v262_v25, %v210_v24  ;;  %v208_v29 = vunpack.c.0.s8 %v207_v28  ;;  %v230_v36 = vsub.s32 0, %v210_v24  ;;  %vm258_vm4 = vcmp.ne.s32.totalorder %v257_v54, 0  ;;  %s372_s6 = scalar_lea.vmem %s284_s10, 32  ;;  %p377_p1 = scmp.lt.s32.totalorder %s284_s10, %s284_s10 }
   0xc   :  { %p373_p0 = scmp.ne.s32.totalorder %s284_s10, %s372_s6  ;;  %p378_p2 = scmp.lt.s32.totalorder %s372_s6, %s372_s6 }
   0xd   :  { %v211_v31 = vsub.s32 %v208_v29, %v210_v24 }
   0xe   :  { %358 = vmatpush3.bf16.msra.mxu1 %v355_v17  ;;  %p379_p3 = por %p378_p2, %p377_p1 }
   0xf   :  { %360 = vmatprep.subr.bf16.mxu1 %v359_v21 }
  0x10   :  { %p380_p4 = pnand %p379_p3, %p373_p0 }
  0x12   :  { %362 = vmatpush3.bf16.msra.mxu1 %v359_v21 }
  0x15   :  { %339 = vmatmul.mubr.msk.f32.vlgmr.msra.gmra.mrb[0].mxu1 %vm123_vm1, %v114_v22 }
  0xde   :  { %v109_v32 = vpop.f32.mrb[0].mxu0 }
  0xdf   :  { %v110_v33 = vadd.f32 %v291_v30, %v109_v32  ;;  %v321_v34 = vpop.f32.mrb[1].mxu0 }
  0xe1   :  { %v212_v35 = vrot.slane %v110_v33, %v211_v31 }
  0xe3   :  { %v213_v37 = vcombine.high %v212_v35, %v212_v35  ;;  %v220_v38 = vrot.slane %v212_v35, %v211_v31 }
  0xe5   :  { %v227_v39 = vrot.slane %v213_v37, %v211_v31  ;;  %v231_v40 = vrot.slane %v220_v38, %v230_v36 }
  0xe7   :  { %v235_v41 = vrot.slane %v227_v39, %v230_v36 }
  0xe8   :  { %v340_v42 = vpop.f32.mrb[0].mxu1 }
  0xe9   :  { %v239_v43 = vadd.f32 %v340_v42, %v235_v41  ;;  %v196_v44 = vpop.f32.mrb[1].mxu1 }
  0xea   :  { %v238_v45 = vadd.f32 %v231_v40, %v196_v44 }
  0xeb   :  { %368 = vtanh.f32 %v239_v43 }
  0xec   :  { %370 = vtanh.f32 %v238_v45 }
  0xf5   :  { %v369_v47 = vpop.eup %368 }
  0xf6   :  { %v371_v48 = vpop.eup %370  ;;  %v250_v51 = vmul.f32 %v369_v47, %v295_v46 }
  0xf7   :  { %v249_v49 = vmul.f32 %v371_v48, %v295_v46 }
  0xf8   :  { %v254_v52 = vsel %vm39_vm2, %v250_v51, 0.0 }
  0xf9   :  { %v251_v50 = vsel %vm39_vm2, %v249_v49, 0.0 }
  0xfa   :  { %252 = vadd.xlane.f32.xlu0 %v251_v50 }
  0xfe   :  { %255 = vadd.xlane.f32.xlu0 %v254_v52 }
 0x187   :  { %v253_v53 = vpop.xlane.xlu0 %252 }
 0x188   :  { %v266_v56 = vrot.slane %v253_v53, %v265_v26 }
 0x18b   :  { %v256_v55 = vpop.xlane.xlu0 %255 }
 0x18c   :  { %v270_v57 = vrot.slane %v256_v55, %v265_v26 }
 0x18e   :  { %v272_v58 = vsel %vm271_vm3, %v270_v57, %v266_v56 }
 0x18f   :  { %v274_v59 = vsel %vm258_vm4, -1e+12, %v272_v58 }
 0x190   :  { %276 = vst.msk [vmem:[#allocation2] sm:$0x3] %vm275_vm5, %v274_v59 }
 0x191   :  { %383 = shalt.err (!%p380_p4)
}
 0x192   :  { %s384_s12 = scalar_lea.hbm %s519_s7, 32 }
 0x193   :  { %p385_p5 = scmp.ne.s32.totalorder %s519_s7, %s384_s12  ;;  %p388_p6 = scmp.lt.u32.totalorder %s384_s12, %s519_s7 }
 0x195   :  { %p390_p7 = pnand %p388_p6, %p385_p5 }
 0x197   :  { %393 = shalt.err (!%p390_p7)
}
 0x198   :  { %286 = dma.vmem_to_hbm [thread:$0]  %s284_s10, 32, %s519_s7, [#allocation3]  }
 0x199   :  { %394 = dma.done.wait [#allocation3], 32  }
 0x19a   :  { %395 = vsyncadd [#allocation3], 4294967264 }
 0x19b   :  { %290 = vsyncpa [#allocation3], 1 }

</bundles_post_ra>
